<compile_context>
chip_gen: v7x
topology: tpu7x:2x2x1
jax: 0.10.0
libtpu: 0.0.40
codegen_flags: <defaults>
</compile_context>

<pallas_src>
import functools

import jax
import jax.numpy as jnp
from jax.experimental import pallas as pl
from jax.experimental.pallas import tpu as pltpu

STATE_DIM = 8      # LunarLander-v2 observation dim
ACTION_DIM = 4     # LunarLander-v2 discrete action dim
HIDDEN = 64
OUT_ROWS = 8       # f32 sublane tile; rows 0..2 carry action / log_prob / entropy


def _actor_kernel(use_given_action,
                  xT_ref,            # (S, TB)  f32  state^T tile
                  w1_ref, b1_ref,    # (H, S), (H, 1)
                  w2_ref, b2_ref,    # (H, H), (H, 1)
                  w3_ref, b3_ref,    # (A, H), (A, 1)
                  extra_ref,         # (1, TB) int32 given actions OR (A, TB) f32 gumbel
                  out_ref):          # (OUT_ROWS, TB) f32 packed results
    x = xT_ref[...]

    # --- MLP hot path: y^T = W @ x^T (MXU) + bias (VPU), batch on lanes ---
    # TODO(synk): optionally cast matmul inputs to bf16 on v6e/v7x for the
    # faster MXU rate; kept f32 to match the float32 PyTorch module closely
    # (the kernel is overhead-bound at these sizes anyway).
    h = jnp.maximum(
        jnp.dot(w1_ref[...], x, preferred_element_type=jnp.float32) + b1_ref[...], 0.0)
    h = jnp.maximum(
        jnp.dot(w2_ref[...], h, preferred_element_type=jnp.float32) + b2_ref[...], 0.0)
    logits = jnp.dot(w3_ref[...], h, preferred_element_type=jnp.float32) + b3_ref[...]

    A, TB = logits.shape

    # --- numerically stable softmax over the action axis (axis 0, A rows) ---
    m = jnp.max(logits, axis=0, keepdims=True)
    z = logits - m
    ez = jnp.exp(z)
    denom = jnp.sum(ez, axis=0, keepdims=True)             # (1, TB)
    inv = pl.reciprocal(denom, approx=True)                # EUP, ~free
    probs = ez * inv
    log_probs = z - jnp.log(denom)                         # log softmax, (A, TB)
    ent = -jnp.sum(probs * log_probs, axis=0, keepdims=True)   # (1, TB)

    row = jax.lax.broadcasted_iota(jnp.int32, (A, TB), 0)

    if use_given_action:
        action = extra_ref[...]                            # (1, TB) int32
    else:
        # Categorical sample via Gumbel-max (noise precomputed per element).
        perturbed = logits + extra_ref[...]
        pmax = jnp.max(perturbed, axis=0, keepdims=True)
        cand = jnp.where(perturbed == pmax, row.astype(jnp.float32), float(A))
        action = jnp.min(cand, axis=0, keepdims=True).astype(jnp.int32)

    sel = row == action                                    # (A, TB)
    logp = jnp.sum(jnp.where(sel, log_probs, 0.0), axis=0, keepdims=True)

    # --- single lane-dense packed store (no width-1 masked stores) ---
    row_out = jax.lax.broadcasted_iota(jnp.int32, (OUT_ROWS, TB), 0)
    packed = jnp.where(row_out == 0, action.astype(jnp.float32),
             jnp.where(row_out == 1, logp,
             jnp.where(row_out == 2, ent, 0.0)))
    out_ref[...] = packed


def init_actor_params(key, state_dim=STATE_DIM, action_dim=ACTION_DIM, hidden=HIDDEN):
    """Init mimicking nn.Linear's U(-1/sqrt(fan_in), 1/sqrt(fan_in)).

    Weights are stored in PyTorch layout (out_features, in_features) and
    biases as (out_features, 1) columns, matching the transposed
    (batch-on-lanes) kernel layout: y^T = W @ x^T + b.
    """
    def linear(k, fan_in, fan_out):
        kw, kb = jax.random.split(k)
        bound = 1.0 / jnp.sqrt(fan_in)
        w = jax.random.uniform(kw, (fan_out, fan_in), jnp.float32, -bound, bound)
        b = jax.random.uniform(kb, (fan_out, 1), jnp.float32, -bound, bound)
        return w, b

    k1, k2, k3 = jax.random.split(key, 3)
    w1, b1 = linear(k1, state_dim, hidden)
    w2, b2 = linear(k2, hidden, hidden)
    w3, b3 = linear(k3, hidden, action_dim)
    return (w1, b1, w2, b2, w3, b3)


def _round_up(n, m):
    return ((n + m - 1) // m) * m


def actor_forward(params, state, action=None, key=None, tile_b=1024):
    """Returns (action (B,1) int32, log_prob (B,1) f32, entropy (B,1) f32)."""
    w1, b1, w2, b2, w3, b3 = params
    H, S = w1.shape
    A = w3.shape[0]

    state = jnp.asarray(state, jnp.float32)
    B = state.shape[0]
    use_given = action is not None

    # Batch tile (lane dim): multiple of 128, capped so small batches stay
    # one tile; big enough that the ~0.35us per-grid-step overhead amortizes,
    # small enough to stay far below v7x's 32 MiB scoped VMEM.
    TB = min(_round_up(tile_b, 128), _round_up(max(B, 1), 128))
    B_pad = _round_up(B, TB)
    n_tiles = B_pad // TB

    # Pad batch to a multiple of TB and put batch on the lane axis.
    xT = jnp.pad(state, ((0, B_pad - B), (0, 0))).T          # (S, B_pad)

    if use_given:
        a = jnp.asarray(action, jnp.int32).reshape(B)
        extra = jnp.pad(a, (0, B_pad - B)).reshape(1, B_pad)  # (1, B_pad) int32
        extra_spec = pl.BlockSpec((1, TB), lambda i: (0, i))
    else:
        if key is None:
            key = jax.random.PRNGKey(0)
        # Per-element Gumbel noise -> distinct randomness in every grid tile.
        extra = jax.random.gumbel(key, (A, B_pad), jnp.float32)
        extra_spec = pl.BlockSpec((A, TB), lambda i: (0, i))

    const = lambda i: (0, 0)
    in_specs = [
        pl.BlockSpec((S, TB), lambda i: (0, i)),              # state^T tile
        pl.BlockSpec((H, S), const), pl.BlockSpec((H, 1), const),
        pl.BlockSpec((H, H), const), pl.BlockSpec((H, 1), const),
        pl.BlockSpec((A, H), const), pl.BlockSpec((A, 1), const),
        extra_spec,
    ]
    out_spec = pl.BlockSpec((OUT_ROWS, TB), lambda i: (0, i))

    flops = 2 * B_pad * (S * H + H * H + H * A)
    transcendentals = B_pad * (A + 2)
    bytes_accessed = 4 * (S * B_pad + OUT_ROWS * B_pad + int(extra.size)
                          + w1.size + b1.size + w2.size + b2.size
                          + w3.size + b3.size)

    kernel = functools.partial(_actor_kernel, use_given)
    out = pl.pallas_call(
        kernel,
        grid=(n_tiles,),
        in_specs=in_specs,
        out_specs=out_spec,
        out_shape=jax.ShapeDtypeStruct((OUT_ROWS, B_pad), jnp.float32),
        compiler_params=pltpu.CompilerParams(
            dimension_semantics=("parallel",)),
        cost_estimate=pl.CostEstimate(
            flops=flops,
            transcendentals=transcendentals,
            bytes_accessed=bytes_accessed),
    )(xT, w1, b1, w2, b2, w3, b3, extra)

    act = out[0, :B].astype(jnp.int32).reshape(B, 1)
    logp = out[1, :B].reshape(B, 1)
    ent = out[2, :B].reshape(B, 1)
    return act, logp, ent


def _reference(params, state):
    """Plain-JAX reference: returns (log_softmax(logits) (B,A), entropy (B,1))."""
    w1, b1, w2, b2, w3, b3 = params
    h = jax.nn.relu(state @ w1.T + b1.T)
    h = jax.nn.relu(h @ w2.T + b2.T)
    logits = h @ w3.T + b3.T
    log_probs = jax.nn.log_softmax(logits, axis=1)
    probs = jnp.exp(log_probs)
    ent = -jnp.sum(probs * log_probs, axis=1, keepdims=True)
    return log_probs, ent


if __name__ == "__main__":
    key = jax.random.PRNGKey(0)
    kp, ks, ka, kg = jax.random.split(key, 4)

    B = 4
    params = init_actor_params(kp)
    state = jax.random.normal(ks, (B, STATE_DIM), jnp.float32)
    given_action = jax.random.randint(ka, (B, 1), 0, ACTION_DIM, jnp.int32)

    ref_logp_full, ref_ent = _reference(params, state)

    # Path 1: action provided (deterministic) -> compare with plain-JAX reference.
    act, logp, ent = actor_forward(params, state, action=given_action)
    jax.block_until_ready((act, logp, ent))
    assert act.shape == (B, 1) and logp.shape == (B, 1) and ent.shape == (B, 1)
    assert jnp.array_equal(act, given_action)
    ref_logp = jnp.take_along_axis(ref_logp_full, given_action, axis=1)
    assert jnp.allclose(logp, ref_logp, atol=2e-3, rtol=2e-3)
    assert jnp.allclose(ent, ref_ent, atol=2e-3, rtol=2e-3)

    # Path 2: action=None -> Gumbel-max Categorical sample inside the kernel.
    act_s, logp_s, ent_s = actor_forward(params, state, key=kg)
    jax.block_until_ready((act_s, logp_s, ent_s))
    assert act_s.shape == (B, 1) and logp_s.shape == (B, 1) and ent_s.shape == (B, 1)
    assert bool(jnp.all((act_s >= 0) & (act_s < ACTION_DIM)))
    ref_logp_s = jnp.take_along_axis(ref_logp_full, act_s, axis=1)
    assert jnp.allclose(logp_s, ref_logp_s, atol=2e-3, rtol=2e-3)
    assert jnp.allclose(ent_s, ref_ent, atol=2e-3, rtol=2e-3)

    print("KERNEL_OK")
</pallas_src>

<mosaic_0001>
module attributes {stable_mosaic.version = 11 : i64} {
  func.func @_actor_kernel(%arg0: i32, %arg1: memref<8x128xf32, #tpu.memory_space<vmem>>, %arg2: memref<64x8xf32, #tpu.memory_space<vmem>>, %arg3: memref<64x1xf32, #tpu.memory_space<vmem>>, %arg4: memref<64x64xf32, #tpu.memory_space<vmem>>, %arg5: memref<64x1xf32, #tpu.memory_space<vmem>>, %arg6: memref<4x64xf32, #tpu.memory_space<vmem>>, %arg7: memref<4x1xf32, #tpu.memory_space<vmem>>, %arg8: memref<1x128xi32, #tpu.memory_space<vmem>>, %arg9: memref<8x128xf32, #tpu.memory_space<vmem>>) attributes {dimension_semantics = [#tpu.dimension_semantics<parallel>], iteration_bounds = array<i64: 1>, scalar_prefetch = 0 : i64, scratch_operands = 0 : i64, tpu.core_type = #tpu.core_type<tc>, window_params = [{transform_indices = @transform_0, window_bounds = array<i64: 8, 128>}, {pipeline_mode = #tpu.pipeline_mode<synchronous>, transform_indices = @transform_1, window_bounds = array<i64: 64, 8>}, {pipeline_mode = #tpu.pipeline_mode<synchronous>, transform_indices = @transform_2, window_bounds = array<i64: 64, 1>}, {pipeline_mode = #tpu.pipeline_mode<synchronous>, transform_indices = @transform_3, window_bounds = array<i64: 64, 64>}, {pipeline_mode = #tpu.pipeline_mode<synchronous>, transform_indices = @transform_4, window_bounds = array<i64: 64, 1>}, {pipeline_mode = #tpu.pipeline_mode<synchronous>, transform_indices = @transform_5, window_bounds = array<i64: 4, 64>}, {pipeline_mode = #tpu.pipeline_mode<synchronous>, transform_indices = @transform_6, window_bounds = array<i64: 4, 1>}, {transform_indices = @transform_7, window_bounds = array<i64: 1, 128>}, {transform_indices = @transform_8, window_bounds = array<i64: 8, 128>}]} {
    %c0 = arith.constant 0 : index
    %c0_0 = arith.constant 0 : index
    %0 = vector.load %arg1[%c0, %c0_0] : memref<8x128xf32, #tpu.memory_space<vmem>>, vector<8x128xf32>
    %c0_1 = arith.constant 0 : index
    %c0_2 = arith.constant 0 : index
    %1 = vector.load %arg2[%c0_1, %c0_2] : memref<64x8xf32, #tpu.memory_space<vmem>>, vector<64x8xf32>
    %cst = arith.constant dense<0.000000e+00> : vector<64x128xf32>
    %2 = tpu.matmul %1, %0, %cst {dimension_numbers = #tpu.dot_dimension_numbers<[1], [0], [0], [1], [0, 0, 1, 1], [], []>} : vector<64x8xf32>, vector<8x128xf32>, vector<64x128xf32> -> vector<64x128xf32>
    %c0_3 = arith.constant 0 : index
    %c0_4 = arith.constant 0 : index
    %3 = vector.load %arg3[%c0_3, %c0_4] : memref<64x1xf32, #tpu.memory_space<vmem>>, vector<64x1xf32>
    %4 = vector.broadcast %3 : vector<64x1xf32> to vector<64x128xf32>
    %5 = arith.addf %2, %4 : vector<64x128xf32>
    %cst_5 = arith.constant 0.000000e+00 : f32
    %6 = vector.broadcast %cst_5 : f32 to vector<64x128xf32>
    %7 = arith.maximumf %5, %6 : vector<64x128xf32>
    %c0_6 = arith.constant 0 : index
    %c0_7 = arith.constant 0 : index
    %8 = vector.load %arg4[%c0_6, %c0_7] : memref<64x64xf32, #tpu.memory_space<vmem>>, vector<64x64xf32>
    %cst_8 = arith.constant dense<0.000000e+00> : vector<64x128xf32>
    %9 = tpu.matmul %8, %7, %cst_8 {dimension_numbers = #tpu.dot_dimension_numbers<[1], [0], [0], [1], [0, 0, 1, 1], [], []>} : vector<64x64xf32>, vector<64x128xf32>, vector<64x128xf32> -> vector<64x128xf32>
    %c0_9 = arith.constant 0 : index
    %c0_10 = arith.constant 0 : index
    %10 = vector.load %arg5[%c0_9, %c0_10] : memref<64x1xf32, #tpu.memory_space<vmem>>, vector<64x1xf32>
    %11 = vector.broadcast %10 : vector<64x1xf32> to vector<64x128xf32>
    %12 = arith.addf %9, %11 : vector<64x128xf32>
    %cst_11 = arith.constant 0.000000e+00 : f32
    %13 = vector.broadcast %cst_11 : f32 to vector<64x128xf32>
    %14 = arith.maximumf %12, %13 : vector<64x128xf32>
    %c0_12 = arith.constant 0 : index
    %c0_13 = arith.constant 0 : index
    %15 = vector.load %arg6[%c0_12, %c0_13] : memref<4x64xf32, #tpu.memory_space<vmem>>, vector<4x64xf32>
    %cst_14 = arith.constant dense<0.000000e+00> : vector<4x128xf32>
    %16 = tpu.matmul %15, %14, %cst_14 {dimension_numbers = #tpu.dot_dimension_numbers<[1], [0], [0], [1], [0, 0, 1, 1], [], []>} : vector<4x64xf32>, vector<64x128xf32>, vector<4x128xf32> -> vector<4x128xf32>
    %c0_15 = arith.constant 0 : index
    %c0_16 = arith.constant 0 : index
    %17 = vector.load %arg7[%c0_15, %c0_16] : memref<4x1xf32, #tpu.memory_space<vmem>>, vector<4x1xf32>
    %18 = vector.broadcast %17 : vector<4x1xf32> to vector<4x128xf32>
    %19 = arith.addf %16, %18 : vector<4x128xf32>
    %cst_17 = arith.constant dense<0xFF800000> : vector<128xf32>
    %20 = vector.multi_reduction <maximumf>, %19, %cst_17 [0] : vector<4x128xf32> to vector<128xf32>
    %21 = vector.shape_cast %20 : vector<128xf32> to vector<1x128xf32>
    %22 = vector.broadcast %21 : vector<1x128xf32> to vector<4x128xf32>
    %23 = arith.subf %19, %22 : vector<4x128xf32>
    %24 = math.exp %23 : vector<4x128xf32>
    %cst_18 = arith.constant dense<0.000000e+00> : vector<128xf32>
    %25 = vector.multi_reduction <add>, %24, %cst_18 [0] : vector<4x128xf32> to vector<128xf32>
    %26 = vector.shape_cast %25 : vector<128xf32> to vector<1x128xf32>
    %27 = tpu.reciprocal %26 {approx = true} : vector<1x128xf32> -> vector<1x128xf32>
    %28 = vector.broadcast %27 : vector<1x128xf32> to vector<4x128xf32>
    %29 = arith.mulf %24, %28 : vector<4x128xf32>
    %30 = math.log %26 : vector<1x128xf32>
    %31 = vector.broadcast %30 : vector<1x128xf32> to vector<4x128xf32>
    %32 = arith.subf %23, %31 : vector<4x128xf32>
    %33 = arith.mulf %29, %32 : vector<4x128xf32>
    %cst_19 = arith.constant dense<0.000000e+00> : vector<128xf32>
    %34 = vector.multi_reduction <add>, %33, %cst_19 [0] : vector<4x128xf32> to vector<128xf32>
    %35 = vector.shape_cast %34 : vector<128xf32> to vector<1x128xf32>
    %cst_20 = arith.constant 0.000000e+00 : f32
    %36 = vector.broadcast %cst_20 : f32 to vector<1x128xf32>
    %37 = arith.subf %36, %35 : vector<1x128xf32>
    %38 = tpu.iota {dimensions = array<i32: 0>} : vector<4x128xi32>
    %c0_21 = arith.constant 0 : index
    %c0_22 = arith.constant 0 : index
    %39 = vector.load %arg8[%c0_21, %c0_22] : memref<1x128xi32, #tpu.memory_space<vmem>>, vector<1x128xi32>
    %40 = vector.broadcast %39 : vector<1x128xi32> to vector<4x128xi32>
    %41 = arith.cmpi eq, %38, %40 : vector<4x128xi32>
    %cst_23 = arith.constant 0.000000e+00 : f32
    %42 = vector.broadcast %cst_23 : f32 to vector<4x128xf32>
    %43 = arith.select %41, %32, %42 : vector<4x128xi1>, vector<4x128xf32>
    %cst_24 = arith.constant dense<0.000000e+00> : vector<128xf32>
    %44 = vector.multi_reduction <add>, %43, %cst_24 [0] : vector<4x128xf32> to vector<128xf32>
    %45 = vector.shape_cast %44 : vector<128xf32> to vector<1x128xf32>
    %46 = tpu.iota {dimensions = array<i32: 0>} : vector<8x128xi32>
    %c0_i32 = arith.constant 0 : i32
    %47 = vector.broadcast %c0_i32 : i32 to vector<8x128xi32>
    %48 = arith.cmpi eq, %46, %47 : vector<8x128xi32>
    %49 = arith.sitofp %39 : vector<1x128xi32> to vector<1x128xf32>
    %c1_i32 = arith.constant 1 : i32
    %50 = vector.broadcast %c1_i32 : i32 to vector<8x128xi32>
    %51 = arith.cmpi eq, %46, %50 : vector<8x128xi32>
    %c2_i32 = arith.constant 2 : i32
    %52 = vector.broadcast %c2_i32 : i32 to vector<8x128xi32>
    %53 = arith.cmpi eq, %46, %52 : vector<8x128xi32>
    %cst_25 = arith.constant 0.000000e+00 : f32
    %54 = vector.shape_cast %37 : vector<1x128xf32> to vector<1x128xf32>
    %55 = vector.broadcast %54 : vector<1x128xf32> to vector<8x128xf32>
    %56 = vector.broadcast %cst_25 : f32 to vector<8x128xf32>
    %57 = arith.select %53, %55, %56 : vector<8x128xi1>, vector<8x128xf32>
    %58 = vector.shape_cast %45 : vector<1x128xf32> to vector<1x128xf32>
    %59 = vector.broadcast %58 : vector<1x128xf32> to vector<8x128xf32>
    %60 = arith.select %51, %59, %57 : vector<8x128xi1>, vector<8x128xf32>
    %61 = vector.shape_cast %49 : vector<1x128xf32> to vector<1x128xf32>
    %62 = vector.broadcast %61 : vector<1x128xf32> to vector<8x128xf32>
    %63 = arith.select %48, %62, %60 : vector<8x128xi1>, vector<8x128xf32>
    %c0_26 = arith.constant 0 : index
    %c0_27 = arith.constant 0 : index
    %64 = vector.load %arg9[%c0_26, %c0_27] : memref<8x128xf32, #tpu.memory_space<vmem>>, vector<8x128xf32>
    tpu.vector_store %arg9[%c0_26, %c0_27], %63 {strides = array<i32>} : memref<8x128xf32, #tpu.memory_space<vmem>>, vector<8x128xf32>,
    return
  }
  func.func @transform_0(%arg0: i32) -> (i32, i32) {
    %c0_i32 = arith.constant 0 : i32
    %c0_i32_0 = arith.constant 0 : i32
    return %c0_i32, %arg0 : i32, i32
  }
  func.func @transform_1(%arg0: i32) -> (i32, i32) {
    %c0_i32 = arith.constant 0 : i32
    %c0_i32_0 = arith.constant 0 : i32
    %c0_i32_1 = arith.constant 0 : i32
    return %c0_i32, %c0_i32_0 : i32, i32
  }
  func.func @transform_2(%arg0: i32) -> (i32, i32) {
    %c0_i32 = arith.constant 0 : i32
    %c0_i32_0 = arith.constant 0 : i32
    %c0_i32_1 = arith.constant 0 : i32
    return %c0_i32, %c0_i32_0 : i32, i32
  }
  func.func @transform_3(%arg0: i32) -> (i32, i32) {
    %c0_i32 = arith.constant 0 : i32
    %c0_i32_0 = arith.constant 0 : i32
    %c0_i32_1 = arith.constant 0 : i32
    return %c0_i32, %c0_i32_0 : i32, i32
  }
  func.func @transform_4(%arg0: i32) -> (i32, i32) {
    %c0_i32 = arith.constant 0 : i32
    %c0_i32_0 = arith.constant 0 : i32
    %c0_i32_1 = arith.constant 0 : i32
    return %c0_i32, %c0_i32_0 : i32, i32
  }
  func.func @transform_5(%arg0: i32) -> (i32, i32) {
    %c0_i32 = arith.constant 0 : i32
    %c0_i32_0 = arith.constant 0 : i32
    %c0_i32_1 = arith.constant 0 : i32
    return %c0_i32, %c0_i32_0 : i32, i32
  }
  func.func @transform_6(%arg0: i32) -> (i32, i32) {
    %c0_i32 = arith.constant 0 : i32
    %c0_i32_0 = arith.constant 0 : i32
    %c0_i32_1 = arith.constant 0 : i32
    return %c0_i32, %c0_i32_0 : i32, i32
  }
  func.func @transform_7(%arg0: i32) -> (i32, i32) {
    %c0_i32 = arith.constant 0 : i32
    %c0_i32_0 = arith.constant 0 : i32
    return %c0_i32, %arg0 : i32, i32
  }
  func.func @transform_8(%arg0: i32) -> (i32, i32) {
    %c0_i32 = arith.constant 0 : i32
    %c0_i32_0 = arith.constant 0 : i32
    return %c0_i32, %arg0 : i32, i32
  }
}

</mosaic_0001>

<bundles_post_ra>
// kernel: tpu_custom_call.1
= control target key start
LH: loop header
LB: loop body
LE: loop exit
PB: predicated region body
PF: predicated region fallthrough
CT: control target
= control target key end

     0   :  { %vm87_vm0 = vcmask 64512   ;;  %v752_v4 = vmov 0   ;;  %s943_s0 = inlined_call_operand.vmem [shape: f32[8,128], index: 0, kind: input, shape index: {}]   ;;  %s944_s1 = inlined_call_operand.vmem [shape: f32[64,8], index: 1, kind: input, shape index: {}]   ;;  %s945_s2 = inlined_call_operand.vmem [shape: f32[64,1], index: 2, kind: input, shape index: {}]   ;;  %s946_s3 = inlined_call_operand.vmem [shape: f32[64,64], index: 3, kind: input, shape index: {}]   ;;  %s947_s4 = inlined_call_operand.vmem [shape: f32[64,1], index: 4, kind: input, shape index: {}]   ;;  %s948_s5 = inlined_call_operand.vmem [shape: f32[4,64], index: 5, kind: input, shape index: {}]   ;;  %s949_s6 = inlined_call_operand.vmem [shape: f32[4,1], index: 6, kind: input, shape index: {}]   ;;  %s950_s7 = inlined_call_operand.vmem [shape: s32[1,128], index: 7, kind: input, shape index: {}]   ;;  %s951_s8 = inlined_call_operand.hbm [shape: f32[8,128], index: 8, kind: output, shape index: {}]  }
   0x1   :  { %v30_v0 = vld [vmem:[%s943_s0] sm:$0xff]  ;;  %v32_v2 = vld [vmem:[%s944_s1 + $0x8] sm:$0xff]  ;;  %v33_v3 = vld [vmem:[%s944_s1 + $0x10] sm:$0xff]  ;;  %720 = vset.pattern.permute.xlu0 %v752_v4  ;;  %721 = vset.pattern.permute.xlu1 %v752_v4 }
   0x2   :  { %v31_v1 = vld [vmem:[%s944_s1] sm:$0xff]  ;;  %626 = vmatprep.subr.mxu0 %v30_v0  ;;  %v41_v6 = vld [vmem:[%s945_s2 + $0x10] sm:$0xff]  ;;  %v34_v7 = vld [vmem:[%s944_s1 + $0x18] sm:$0xff] }
   0x3   :  { %628 = vmatprep.mubr.msk.f32.mxu0 %vm87_vm0, %v31_v1  ;;  %627 = vmatpush3.msra.mxu0 %v30_v0  ;;  %v39_v5 = vld [vmem:[%s945_s2] sm:$0xff]  ;;  %v40_v9 = vld [vmem:[%s945_s2 + $0x8] sm:$0xff]  ;;  %v42_v10 = vld [vmem:[%s945_s2 + $0x18] sm:$0xff] }
   0x4   :  { %629 = vmatmul.mubr.msk.f32.vlgmr.msra.gmra.mrb[0].mxu0 %vm87_vm0, %v32_v2  ;;  %49 = vperm.xlu0 %720, %v39_v5   ;;  %v35_v8 = vld [vmem:[%s944_s1 + $0x20] sm:$0xff]  ;;  %v36_v11 = vld [vmem:[%s944_s1 + $0x28] sm:$0xff] }
   0x5   :  { %631 = vmatprep.mubr.msk.f32.mxu0 %vm87_vm0, %v33_v3  ;;  %59 = vperm.xlu1 %721, %v41_v6  }
   0x8   :  { %632 = vmatmul.mubr.msk.f32.gmra.mrb[2].mxu0 %vm87_vm0, %v34_v7  ;;  %54 = vperm.xlu0 %720, %v40_v9  }
   0x9   :  { %634 = vmatprep.mubr.msk.f32.mxu0 %vm87_vm0, %v35_v8 }
   0xa   :  { %13 = vsyncpa [#allocation3], 0  ;;  %v37_v12 = vld [vmem:[%s944_s1 + $0x30] sm:$0xff]  ;;  %v43_v13 = vld [vmem:[%s945_s2 + $0x20] sm:$0xff]  ;;  %64 = vperm.xlu1 %721, %v42_v10   ;;  %vm281_vm1 = vcmask 523264   ;;  %v753_v7 = vmov 0.0|0.0  }
   0xb   :  { %v44_v14 = vld [vmem:[%s945_s2 + $0x28] sm:$0xff]  ;;  %v38_v15 = vld [vmem:[%s944_s1 + $0x38] sm:$0xff]  ;;  %v45_v16 = vld [vmem:[%s945_s2 + $0x30] sm:$0xff]  ;;  %703 = vmatprep.subr.bf16.mxu0 %v753_v7  ;;  %vm754_vm2 = vmmov 0   ;;  %v755_v8 = vmov 0.0   ;;  %vm499_vm3 = vcmask 1043456  }
   0xc   :  { %635 = vmatmul.mubr.msk.f32.gmra.mrb[4].mxu0 %vm87_vm0, %v36_v11  ;;  %69 = vperm.xlu0 %720, %v43_v13   ;;  %v46_v17 = vld [vmem:[%s945_s2 + $0x38] sm:$0xff]  ;;  %v233_v18 = vld [vmem:[%s947_s4] sm:$0xff]  ;;  %v234_v19 = vld [vmem:[%s947_s4 + $0x8] sm:$0xff] }
   0xd   :  { %637 = vmatprep.mubr.msk.f32.mxu0 %vm87_vm0, %v37_v12  ;;  %v235_v20 = vld [vmem:[%s947_s4 + $0x10] sm:$0xff]  ;;  %v236_v21 = vld [vmem:[%s947_s4 + $0x18] sm:$0xff]  ;;  %v237_v22 = vld [vmem:[%s947_s4 + $0x20] sm:$0xff] }
   0xe   :  { %74 = vperm.xlu1 %721, %v44_v14   ;;  %v238_v23 = vld [vmem:[%s947_s4 + $0x28] sm:$0xff]  ;;  %v239_v24 = vld [vmem:[%s947_s4 + $0x30] sm:$0xff]  ;;  %v240_v25 = vld [vmem:[%s947_s4 + $0x38] sm:$0xff] }
   0xf   :  { %v420_v26 = vld [vmem:[%s949_s6] sm:$0xf]  ;;  %v226_v0 = vld [vmem:[%s946_s3 + $0x8] sm:$0xff]  ;;  %v227_v1 = vld [vmem:[%s946_s3 + $0x10] sm:$0xff] }
  0x10   :  { %638 = vmatmul.mubr.msk.f32.gmra.mrb[6].mxu0 %vm87_vm0, %v38_v15  ;;  %79 = vperm.xlu0 %720, %v45_v16   ;;  %v225_v27 = vld [vmem:[%s946_s3] sm:$0xff]  ;;  %v228_v2 = vld [vmem:[%s946_s3 + $0x18] sm:$0xff]  ;;  %v230_v4 = vld [vmem:[%s946_s3 + $0x28] sm:$0xff] }
  0x11   :  { %656 = vmatprep.mubr.msk.f32.mxu1 %vm281_vm1, %v225_v27  ;;  %v229_v3 = vld [vmem:[%s946_s3 + $0x20] sm:$0xff]  ;;  %v231_v5 = vld [vmem:[%s946_s3 + $0x30] sm:$0xff]  ;;  %v232_v6 = vld [vmem:[%s946_s3 + $0x38] sm:$0xff]  ;;  %684 = vmatprep.mubr.msk.f32.mxu0 %vm754_vm2, %v755_v8 }
  0x12   :  { %84 = vperm.xlu1 %721, %v46_v17  }
  0x14   :  { %243 = vperm.xlu0 %720, %v233_v18  }
  0x16   :  { %248 = vperm.xlu1 %721, %v234_v19  }
  0x18   :  { %253 = vperm.xlu0 %720, %v235_v20  }
  0x1a   :  { %258 = vperm.xlu1 %721, %v236_v21  }
  0x1c   :  { %263 = vperm.xlu0 %720, %v237_v22  }
  0x1e   :  { %268 = vperm.xlu1 %721, %v238_v23  }
  0x20   :  { %273 = vperm.xlu0 %720, %v239_v24  }
  0x22   :  { %278 = vperm.xlu1 %721, %v240_v25  }
  0x24   :  { %423 = vperm.xlu0 %720, %v420_v26  }
  0x83   :  { %v50_v28 = vpop.permute.xlu0 %49 }
  0x84   :  { %v60_v29 = vpop.permute.xlu1 %59 }
  0x87   :  { %v55_v30 = vpop.permute.xlu0 %54 }
  0x89   :  { %v65_v31 = vpop.permute.xlu1 %64 }
  0x8b   :  { %v70_v44 = vpop.permute.xlu0 %69 }
  0x8d   :  { %v75_v41 = vpop.permute.xlu1 %74 }
  0x8f   :  { %v80_v56 = vpop.permute.xlu0 %79 }
  0x91   :  { %v85_v53 = vpop.permute.xlu1 %84 }
  0x93   :  { %v244_v10 = vpop.permute.xlu0 %243 }
  0x95   :  { %v249_v9 = vpop.permute.xlu1 %248 }
  0x97   :  { %v254_v13 = vpop.permute.xlu0 %253 }
  0x99   :  { %v259_v11 = vpop.permute.xlu1 %258 }
  0x9b   :  { %v264_v25 = vpop.permute.xlu0 %263 }
  0x9d   :  { %v269_v22 = vpop.permute.xlu1 %268 }
  0xd7   :  { %v630_v32 = vpop.f32.mrb[0].mxu0 }
  0xd8   :  { %v184_v33 = vadd.f32 %v630_v32, %v55_v30  ;;  %v178_v34 = vpop.f32.mrb[1].mxu0 }
  0xd9   :  { %v179_v35 = vadd.f32 %v178_v34, %v50_v28  ;;  %v279_v34 = vpop.permute.xlu1 %278 }
  0xda   :  { %v218_v36 = vmax.f32 %v184_v33, 0.0 }
  0xdb   :  { %v217_v37 = vmax.f32 %v179_v35, 0.0  ;;  %v633_v38 = vpop.f32.mrb[2].mxu0 }
  0xdc   :  { %v194_v39 = vadd.f32 %v633_v38, %v65_v31  ;;  %v188_v40 = vpop.f32.mrb[3].mxu0 }
  0xdd   :  { %v189_v42 = vadd.f32 %v188_v40, %v60_v29  ;;  %v687_v43 = vpack.c.bf16 %v218_v36, %v217_v37  ;;  %v274_v37 = vpop.permute.xlu0 %273 }
  0xde   :  { %v220_v45 = vmax.f32 %v194_v39, 0.0 }
  0xdf   :  { %v219_v46 = vmax.f32 %v189_v42, 0.0  ;;  %v636_v47 = vpop.f32.mrb[4].mxu0  ;;  %688 = vmatprep.subr.bf16.mxu1 %v687_v43 }
  0xe0   :  { %v204_v48 = vadd.f32 %v636_v47, %v75_v41  ;;  %v198_v49 = vpop.f32.mrb[5].mxu0  ;;  %690 = vmatpush3.bf16.msra.mxu1 %v687_v43 }
  0xe1   :  { %v691_v50 = vpack.c.bf16 %v220_v45, %v219_v46  ;;  %v199_v51 = vadd.f32 %v198_v49, %v70_v44  ;;  %v419_v45 = vld [vmem:[%s948_s5] sm:$0xf]  ;;  %v424_v46 = vpop.permute.xlu0 %423 }
  0xe2   :  { %v222_v52 = vmax.f32 %v204_v48, 0.0 }
  0xe3   :  { %v221_v54 = vmax.f32 %v199_v51, 0.0  ;;  %v639_v55 = vpop.f32.mrb[6].mxu0  ;;  %692 = vmatprep.subr.bf16.mxu1 %v691_v50 }
  0xe4   :  { %v214_v57 = vadd.f32 %v639_v55, %v85_v53  ;;  %v208_v58 = vpop.f32.mrb[7].mxu0  ;;  %694 = vmatpush3.bf16.msra.mxu1 %v691_v50 }
  0xe5   :  { %v695_v59 = vpack.c.bf16 %v222_v52, %v221_v54  ;;  %v209_v60 = vadd.f32 %v208_v58, %v80_v56 }
  0xe6   :  { %v224_v61 = vmax.f32 %v214_v57, 0.0 }
  0xe7   :  { %v223_v62 = vmax.f32 %v209_v60, 0.0  ;;  %696 = vmatprep.subr.bf16.mxu1 %v695_v59 }
  0xe8   :  { %698 = vmatpush3.bf16.msra.mxu1 %v695_v59 }
  0xe9   :  { %v699_v63 = vpack.c.bf16 %v224_v61, %v223_v62 }
  0xeb   :  { %700 = vmatprep.subr.bf16.mxu1 %v699_v63 }
  0xec   :  { %702 = vmatpush3.bf16.msra.mxu1 %v699_v63 }
  0xef   :  { %657 = vmatmul.mubr.msk.f32.vlgmr.msra.gmra.mrb[0].mxu1 %vm281_vm1, %v226_v0 }
  0xf0   :  { %659 = vmatprep.mubr.msk.f32.mxu1 %vm281_vm1, %v227_v1 }
  0xf3   :  { %660 = vmatmul.mubr.msk.f32.gmra.mrb[2].mxu1 %vm281_vm1, %v228_v2  ;;  %v531_v2 = vlaneseq }
  0xf4   :  { %662 = vmatprep.mubr.msk.f32.mxu1 %vm281_vm1, %v229_v3 }
  0xf7   :  { %663 = vmatmul.mubr.msk.f32.gmra.mrb[4].mxu1 %vm281_vm1, %v230_v4  ;;  %v532_v4 = vshrl.u32 %v531_v2, 7 }
  0xf8   :  { %665 = vmatprep.mubr.msk.f32.mxu1 %vm281_vm1, %v231_v5 }
  0xf9   :  { %v536_v5 = vsub.s32 0, %v532_v4  ;;  %vm550_vm5 = vcmp.eq.s32.totalorder %v532_v4, 2  ;;  %vm549_vm6 = vcmp.eq.s32.totalorder %v532_v4, 1  ;;  %vm547_vm7 = vcmp.eq.s32.totalorder %v532_v4, 0 }
  0xfb   :  { %666 = vmatmul.mubr.msk.f32.gmra.mrb[6].mxu1 %vm281_vm1, %v232_v6  ;;  %v533_v6 = vld [vmem:[%s950_s7] sm:$0x1]  ;;  %s756_s7 = smov [#allocation2]  }
  0xfc   :  { %s567_s22 = sshll.u32 %s756_s7, 4  ;;  %s568_s22 = int_to_ptr.vmem [resolvable:$true] %s567_s22 }
  0xfd   :  { %s728_s23 = scalar_lea.vmem %s568_s22, 128  ;;  %p733_p1 = scmp.lt.s32.totalorder %s568_s22, %s568_s22 }
  0xfe   :  { %p729_p0 = scmp.ne.s32.totalorder %s568_s22, %s728_s23  ;;  %p734_p2 = scmp.lt.s32.totalorder %s728_s23, %s728_s23 }
 0x100   :  { %p735_p3 = por %p734_p2, %p733_p1 }
 0x102   :  { %p736_p4 = pnand %p735_p3, %p729_p0 }
 0x1c2   :  { %v658_v12 = vpop.f32.mrb[0].mxu1 }
 0x1c3   :  { %v378_v14 = vadd.f32 %v658_v12, %v249_v9  ;;  %v372_v15 = vpop.f32.mrb[1].mxu1 }
 0x1c4   :  { %v373_v16 = vadd.f32 %v372_v15, %v244_v10 }
 0x1c5   :  { %v412_v17 = vmax.f32 %v378_v14, 0.0 }
 0x1c6   :  { %v411_v18 = vmax.f32 %v373_v16, 0.0  ;;  %v661_v19 = vpop.f32.mrb[2].mxu1 }
 0x1c7   :  { %v388_v20 = vadd.f32 %v661_v19, %v259_v11  ;;  %v382_v21 = vpop.f32.mrb[3].mxu1 }
 0x1c8   :  { %v704_v23 = vpack.c.bf16 %v412_v17, %v411_v18  ;;  %v383_v24 = vadd.f32 %v382_v21, %v254_v13 }
 0x1c9   :  { %v414_v26 = vmax.f32 %v388_v20, 0.0 }
 0x1ca   :  { %v413_v27 = vmax.f32 %v383_v24, 0.0  ;;  %v664_v28 = vpop.f32.mrb[4].mxu1  ;;  %705 = vmatpush3.bf16.msra.mxu0 %v704_v23 }
 0x1cb   :  { %v398_v29 = vadd.f32 %v664_v28, %v269_v22  ;;  %v392_v30 = vpop.f32.mrb[5].mxu1  ;;  %706 = vmatprep.subr.bf16.mxu0 %v753_v7 }
 0x1cc   :  { %v707_v31 = vpack.c.bf16 %v414_v26, %v413_v27  ;;  %v393_v32 = vadd.f32 %v392_v30, %v264_v25  ;;  %v548_v26 = vcvt.s32.f32 %v533_v6 }
 0x1cd   :  { %v416_v33 = vmax.f32 %v398_v29, 0.0 }
 0x1ce   :  { %v415_v35 = vmax.f32 %v393_v32, 0.0  ;;  %v667_v36 = vpop.f32.mrb[6].mxu1  ;;  %708 = vmatpush3.bf16.msra.mxu0 %v707_v31  ;;  %v557_v30 = vrot.slane %v548_v26, %v536_v5 }
 0x1cf   :  { %v408_v38 = vadd.f32 %v667_v36, %v279_v34  ;;  %v402_v39 = vpop.f32.mrb[7].mxu1  ;;  %709 = vmatprep.subr.bf16.mxu0 %v753_v7 }
 0x1d0   :  { %v710_v40 = vpack.c.bf16 %v416_v33, %v415_v35  ;;  %v403_v41 = vadd.f32 %v402_v39, %v274_v37 }
 0x1d1   :  { %v418_v42 = vmax.f32 %v408_v38, 0.0 }
 0x1d2   :  { %v417_v43 = vmax.f32 %v403_v41, 0.0  ;;  %711 = vmatpush3.bf16.msra.mxu0 %v710_v40 }
 0x1d3   :  { %712 = vmatprep.subr.bf16.mxu0 %v753_v7  ;;  %v537_v7 = vrot.slane %v533_v6, %v536_v5 }
 0x1d4   :  { %v713_v44 = vpack.c.bf16 %v418_v42, %v417_v43 }
 0x1d5   :  { %vm538_vm4 = vcmp.eq.s32.totalorder %v532_v4, %v537_v7 }
 0x1d6   :  { %714 = vmatpush3.bf16.msra.mxu0 %v713_v44 }
 0x1d9   :  { %685 = vmatmul.mubr.msk.f32.vlgmr.msra.gmra.mrb[8].mxu0 %vm281_vm1, %v419_v45 }
 0x2ac   :  { %v495_v47 = vpop.f32.mrb[8].mxu0 }
 0x2ad   :  { %v496_v48 = vadd.f32 %v495_v47, %v424_v46  ;;  %v686_v49 = vpop.f32.mrb[9].mxu0 }
 0x2af   :  { %v500_v50 = vsel %vm499_vm3, %v496_v48, -inf }
 0x2b0   :  { %v501_v51 = vrot.slane %v500_v50, 4 }
 0x2b2   :  { %v502_v52 = vmax.f32 %v500_v50, %v501_v51 }
 0x2b4   :  { %v503_v53 = vrot.slane %v502_v52, 2 }
 0x2b6   :  { %v504_v54 = vmax.f32 %v502_v52, %v503_v53 }
 0x2b8   :  { %v505_v55 = vrot.slane %v504_v54, 1 }
 0x2ba   :  { %v506_v56 = vmax.f32 %v504_v54, %v505_v55 }
 0x2bc   :  { %v507_v57 = vsub.f32 %v496_v48, %v506_v56 }
 0x2be   :  { %v508_v58 = vmul.f32 1.442695, %v507_v57 }
 0x2c0   :  { %722 = vpow2.f32 %v508_v58 }
 0x2ca   :  { %v723_v59 = vpop.eup %722 }
 0x2cb   :  { %v510_v60 = vsel %vm499_vm3, %v723_v59, 0.0 }
 0x2cc   :  { %v511_v61 = vrot.slane %v510_v60, 4 }
 0x2ce   :  { %v512_v62 = vadd.f32 %v511_v61, %v510_v60 }
 0x2d0   :  { %v513_v63 = vrot.slane %v512_v62, 2 }
 0x2d2   :  { %v514_v0 = vadd.f32 %v513_v63, %v512_v62 }
 0x2d4   :  { %v515_v1 = vrot.slane %v514_v0, 1 }
 0x2d6   :  { %v516_v3 = vadd.f32 %v515_v1, %v514_v0 }
 0x2d8   :  { %724 = vrcp.f32 %v516_v3 }
 0x2d9   :  { %726 = vlog2.f32 %v516_v3 }
 0x2e2   :  { %v725_v8 = vpop.eup %724 }
 0x2e3   :  { %v727_v9 = vpop.eup %726  ;;  %v518_v11 = vmul.f32 %v725_v8, %v723_v59 }
 0x2e4   :  { %v520_v10 = vmul.f32 0.6931472, %v727_v9 }
 0x2e6   :  { %v521_v12 = vsub.f32 %v507_v57, %v520_v10 }
 0x2e8   :  { %v522_v13 = vmul.f32 %v521_v12, %v518_v11  ;;  %v539_v14 = vsel %vm538_vm4, %v521_v12, 0.0 }
 0x2e9   :  { %v540_v15 = vsel %vm499_vm3, %v539_v14, 0.0 }
 0x2ea   :  { %v523_v16 = vsel %vm499_vm3, %v522_v13, 0.0  ;;  %v541_v17 = vrot.slane %v540_v15, 4 }
 0x2eb   :  { %v524_v18 = vrot.slane %v523_v16, 4 }
 0x2ec   :  { %v542_v19 = vadd.f32 %v541_v17, %v540_v15 }
 0x2ed   :  { %v525_v20 = vadd.f32 %v524_v18, %v523_v16 }
 0x2ee   :  { %v543_v21 = vrot.slane %v542_v19, 2 }
 0x2ef   :  { %v526_v22 = vrot.slane %v525_v20, 2 }
 0x2f0   :  { %v544_v23 = vadd.f32 %v543_v21, %v542_v19 }
 0x2f1   :  { %v527_v24 = vadd.f32 %v526_v22, %v525_v20 }
 0x2f2   :  { %v545_v27 = vrot.slane %v544_v23, 1 }
 0x2f3   :  { %v528_v25 = vrot.slane %v527_v24, 1 }
 0x2f4   :  { %v546_v31 = vadd.f32 %v545_v27, %v544_v23 }
 0x2f5   :  { %v529_v28 = vadd.f32 %v528_v25, %v527_v24 }
 0x2f7   :  { %v530_v29 = vsub.f32 0.0, %v529_v28 }
 0x2f9   :  { %v551_v32 = vsel %vm550_vm5, %v530_v29, 0.0 }
 0x2fa   :  { %v552_v33 = vsel %vm549_vm6, %v546_v31, %v551_v32 }
 0x2fb   :  { %v559_v34 = vsel %vm547_vm7, %v557_v30, %v552_v33 }
 0x2fc   :  { %560 = vst [vmem:[#allocation2] sm:$0xff] %v559_v34 }
 0x2fd   :  { %739 = shalt.err (!%p736_p4)
}
 0x2fe   :  { %s740_s26 = scalar_lea.hbm %s951_s8, 128 }
 0x2ff   :  { %p741_p5 = scmp.ne.s32.totalorder %s951_s8, %s740_s26  ;;  %p744_p6 = scmp.lt.u32.totalorder %s740_s26, %s951_s8 }
 0x301   :  { %p746_p7 = pnand %p744_p6, %p741_p5 }
 0x303   :  { %749 = shalt.err (!%p746_p7)
}
 0x304   :  { %570 = dma.vmem_to_hbm [thread:$0]  %s568_s22, 128, %s951_s8, [#allocation3]  }
 0x305   :  { %750 = dma.done.wait [#allocation3], 128  }
 0x306   :  { %751 = vsyncadd [#allocation3], 4294967168 }
 0x307   :  { %574 = vsyncpa [#allocation3], 1 }

</bundles_post_ra>
